<compile_context>
chip_gen: v6e
topology: v6e:2x2x1
jax: 0.10.0
libtpu: 0.0.40
codegen_flags: <defaults>
</compile_context>

<pallas_src>
import jax
import jax.numpy as jnp
from jax.experimental import pallas as pl
from jax.experimental.pallas import tpu as pltpu

# ---------------- model dimensions (from MLP.__init__ defaults) -------------
INPUT_DIM = 3
HIDDEN = [20, 10]
OUTPUT_DIM = 3

ONES_ROW = INPUT_DIM      # row of x_fm that carries the constant 1.0

# f32 sublane-padded feature dims (multiples of 8)
IN_PAD = 8                # 3 (+1 ones row) -> 8
H1_PAD = 24               # 20 (+1 ones row) -> 24
H2_PAD = 16               # 10 (+1 ones row) -> 16
OUT_PAD = 8               # 3 -> 8

LANE = 128                # lane granularity for the batch axis
TILE_B = 32768            # batch lanes per grid step (~4 MiB VMEM incl. 2x buffers)


def _round_up(n, m):
    return (n + m - 1) // m * m


# ----------------------------- Pallas kernel --------------------------------
def mlp_kernel(x_ref, w1_ref, w2_ref, w3_ref, o_ref):
    """One batch tile, feature-major; biases folded into augmented weights.

    x:  (IN_PAD,  TB)   rows 0..2 features, row 3 == 1.0
    W1: (H1_PAD, IN_PAD)   (bias in col 3, ones-propagation row 20)
    W2: (H2_PAD, H1_PAD)   (bias in col 20, ones-propagation row 10)
    W3: (OUT_PAD, H2_PAD)  (bias in col 10)
    o:  (OUT_PAD, TB)   rows 0..2 valid
    """
    x = x_ref[...]
    h1 = jnp.maximum(
        jnp.dot(w1_ref[...], x, preferred_element_type=jnp.float32), 0.0
    )
    h2 = jnp.maximum(
        jnp.dot(w2_ref[...], h1, preferred_element_type=jnp.float32), 0.0
    )
    o_ref[...] = jnp.dot(w3_ref[...], h2, preferred_element_type=jnp.float32)


# ------------------------------ wrappers -------------------------------------
def prepare_params(params):
    """Pad / augment parameters ONCE (outside the per-call path).

    `params` uses PyTorch nn.Linear layout: W_i is (out, in), b_i is (out,).
    Biases are folded into the weight matrices via an appended ones row, and a
    1.0 in the first padding row propagates the ones row through each ReLU
    (relu(1) == 1), keeping the padded rows semantically inert.
    """
    f32 = jnp.float32
    W1 = params["W1"].astype(f32)
    b1 = params["b1"].astype(f32)
    W2 = params["W2"].astype(f32)
    b2 = params["b2"].astype(f32)
    W3 = params["W3"].astype(f32)
    b3 = params["b3"].astype(f32)

    h1, h2 = HIDDEN

    W1a = jnp.zeros((H1_PAD, IN_PAD), f32)
    W1a = W1a.at[:h1, :INPUT_DIM].set(W1)
    W1a = W1a.at[:h1, ONES_ROW].set(b1)
    W1a = W1a.at[h1, ONES_ROW].set(1.0)       # h1-activations row `h1` == 1.0

    W2a = jnp.zeros((H2_PAD, H1_PAD), f32)
    W2a = W2a.at[:h2, :h1].set(W2)
    W2a = W2a.at[:h2, h1].set(b2)
    W2a = W2a.at[h2, h1].set(1.0)             # h2-activations row `h2` == 1.0

    W3a = jnp.zeros((OUT_PAD, H2_PAD), f32)
    W3a = W3a.at[:OUTPUT_DIM, :h2].set(W3)
    W3a = W3a.at[:OUTPUT_DIM, h2].set(b3)

    return {"W1a": W1a, "W2a": W2a, "W3a": W3a}


@jax.jit
def mlp_forward(x, prepped):
    """x: (B, 3) float32, batch-major (as the PyTorch module consumes).
    prepped: output of prepare_params().  Returns (B, 3) float32."""
    B = x.shape[0]
    tb = min(TILE_B, _round_up(max(B, 1), LANE))   # batch lanes per grid step
    Bp = _round_up(max(B, 1), tb)                  # padded batch
    grid = (Bp // tb,)

    # Feature-major, lean padding: (B,3) -> (8, Bp); row 3 carries the 1.0 used
    # by the folded biases.  ~32*Bp bytes total.
    x_fm = jnp.pad(
        jnp.concatenate(
            [x.astype(jnp.float32).T, jnp.ones((1, B), jnp.float32)], axis=0
        ),
        ((0, IN_PAD - (INPUT_DIM + 1)), (0, Bp - B)),
    )

    flops = 2 * Bp * (IN_PAD * H1_PAD + H1_PAD * H2_PAD + H2_PAD * OUT_PAD)
    param_bytes = 4 * (H1_PAD * IN_PAD + H2_PAD * H1_PAD + OUT_PAD * H2_PAD)
    bytes_accessed = 4 * Bp * (IN_PAD + OUT_PAD) + param_bytes

    out_fm = pl.pallas_call(
        mlp_kernel,
        out_shape=jax.ShapeDtypeStruct((OUT_PAD, Bp), jnp.float32),
        grid_spec=pltpu.PrefetchScalarGridSpec(
            num_scalar_prefetch=0,
            grid=grid,
            in_specs=[
                # activations: tiled along the batch (lane) axis
                pl.BlockSpec((IN_PAD, tb), lambda i: (0, i)),
                # weights: constant index_map -> VMEM-resident across steps
                pl.BlockSpec((H1_PAD, IN_PAD), lambda i: (0, 0)),
                pl.BlockSpec((H2_PAD, H1_PAD), lambda i: (0, 0)),
                pl.BlockSpec((OUT_PAD, H2_PAD), lambda i: (0, 0)),
            ],
            out_specs=pl.BlockSpec((OUT_PAD, tb), lambda i: (0, i)),
        ),
        compiler_params=pltpu.CompilerParams(
            dimension_semantics=("parallel",),
        ),
        cost_estimate=pl.CostEstimate(
            flops=flops, transcendentals=0, bytes_accessed=bytes_accessed
        ),
    )(x_fm, prepped["W1a"], prepped["W2a"], prepped["W3a"])

    # Tiny slice/transpose back to batch-major (B, 3).
    return out_fm[:OUTPUT_DIM, :B].T


# --------------------- deterministic parameter init --------------------------
def init_params(key):
    """Mimics nn.Linear default init, PyTorch layout: W (out, in), b (out,)."""
    dims = [INPUT_DIM] + HIDDEN + [OUTPUT_DIM]
    params = {}
    for i, (fan_in, fan_out) in enumerate(zip(dims[:-1], dims[1:]), start=1):
        key, kw, kb = jax.random.split(key, 3)
        bound = 1.0 / (fan_in ** 0.5)
        params[f"W{i}"] = jax.random.uniform(
            kw, (fan_out, fan_in), jnp.float32, -bound, bound
        )
        params[f"b{i}"] = jax.random.uniform(
            kb, (fan_out,), jnp.float32, -bound, bound
        )
    return params


# pure-JAX reference for correctness check (PyTorch layout)
def mlp_ref(x, p):
    h = jnp.maximum(x @ p["W1"].T + p["b1"], 0.0)
    h = jnp.maximum(h @ p["W2"].T + p["b2"], 0.0)
    return h @ p["W3"].T + p["b3"]


# TODO(synk): training loop / Adam optimizer / MSE + normalized losses / LHS
# dataset generation from the PyTorch module are host-side training utilities,
# not part of the forward pass, and are intentionally not translated to Pallas.

if __name__ == "__main__":
    key = jax.random.PRNGKey(0)
    key, kx1, kx2 = jax.random.split(key, 3)

    params = init_params(key)
    prepped = prepare_params(params)   # one-time pad / bias-fold of weights

    # small deterministic checks: lane-multiple and ragged batch sizes
    for batch, kx in ((8, kx1), (5, kx2)):
        x = jax.random.normal(kx, (batch, INPUT_DIM), dtype=jnp.float32)
        out = jax.block_until_ready(mlp_forward(x, prepped))
        ref = mlp_ref(x, params)
        assert out.shape == (batch, OUTPUT_DIM), out.shape
        assert jnp.allclose(out, ref, atol=1e-5, rtol=1e-5), (
            f"Pallas output mismatch vs reference (batch={batch})"
        )

    print("KERNEL_OK")
</pallas_src>

<mosaic_0001>
module attributes {stable_mosaic.version = 11 : i64} {
  func.func @mlp_kernel(%arg0: i32, %arg1: memref<8x128xf32, #tpu.memory_space<vmem>>, %arg2: memref<24x8xf32, #tpu.memory_space<vmem>>, %arg3: memref<16x24xf32, #tpu.memory_space<vmem>>, %arg4: memref<8x16xf32, #tpu.memory_space<vmem>>, %arg5: memref<8x128xf32, #tpu.memory_space<vmem>>) attributes {dimension_semantics = [#tpu.dimension_semantics<parallel>], iteration_bounds = array<i64: 1>, scalar_prefetch = 0 : i64, scratch_operands = 0 : i64, tpu.core_type = #tpu.core_type<tc>, window_params = [{transform_indices = @transform_0, window_bounds = array<i64: 8, 128>}, {pipeline_mode = #tpu.pipeline_mode<synchronous>, transform_indices = @transform_1, window_bounds = array<i64: 24, 8>}, {pipeline_mode = #tpu.pipeline_mode<synchronous>, transform_indices = @transform_2, window_bounds = array<i64: 16, 24>}, {pipeline_mode = #tpu.pipeline_mode<synchronous>, transform_indices = @transform_3, window_bounds = array<i64: 8, 16>}, {transform_indices = @transform_4, window_bounds = array<i64: 8, 128>}]} {
    %c0 = arith.constant 0 : index
    %c0_0 = arith.constant 0 : index
    %0 = vector.load %arg1[%c0, %c0_0] : memref<8x128xf32, #tpu.memory_space<vmem>>, vector<8x128xf32>
    %c0_1 = arith.constant 0 : index
    %c0_2 = arith.constant 0 : index
    %1 = vector.load %arg2[%c0_1, %c0_2] : memref<24x8xf32, #tpu.memory_space<vmem>>, vector<24x8xf32>
    %cst = arith.constant dense<0.000000e+00> : vector<24x128xf32>
    %2 = tpu.matmul %1, %0, %cst {dimension_numbers = #tpu.dot_dimension_numbers<[1], [0], [0], [1], [0, 0, 1, 1], [], []>} : vector<24x8xf32>, vector<8x128xf32>, vector<24x128xf32> -> vector<24x128xf32>
    %cst_3 = arith.constant 0.000000e+00 : f32
    %3 = vector.broadcast %cst_3 : f32 to vector<24x128xf32>
    %4 = arith.maximumf %2, %3 : vector<24x128xf32>
    %c0_4 = arith.constant 0 : index
    %c0_5 = arith.constant 0 : index
    %5 = vector.load %arg3[%c0_4, %c0_5] : memref<16x24xf32, #tpu.memory_space<vmem>>, vector<16x24xf32>
    %cst_6 = arith.constant dense<0.000000e+00> : vector<16x128xf32>
    %6 = tpu.matmul %5, %4, %cst_6 {dimension_numbers = #tpu.dot_dimension_numbers<[1], [0], [0], [1], [0, 0, 1, 1], [], []>} : vector<16x24xf32>, vector<24x128xf32>, vector<16x128xf32> -> vector<16x128xf32>
    %cst_7 = arith.constant 0.000000e+00 : f32
    %7 = vector.broadcast %cst_7 : f32 to vector<16x128xf32>
    %8 = arith.maximumf %6, %7 : vector<16x128xf32>
    %c0_8 = arith.constant 0 : index
    %c0_9 = arith.constant 0 : index
    %9 = vector.load %arg4[%c0_8, %c0_9] : memref<8x16xf32, #tpu.memory_space<vmem>>, vector<8x16xf32>
    %cst_10 = arith.constant dense<0.000000e+00> : vector<8x128xf32>
    %10 = tpu.matmul %9, %8, %cst_10 {dimension_numbers = #tpu.dot_dimension_numbers<[1], [0], [0], [1], [0, 0, 1, 1], [], []>} : vector<8x16xf32>, vector<16x128xf32>, vector<8x128xf32> -> vector<8x128xf32>
    %c0_11 = arith.constant 0 : index
    %c0_12 = arith.constant 0 : index
    %11 = vector.load %arg5[%c0_11, %c0_12] : memref<8x128xf32, #tpu.memory_space<vmem>>, vector<8x128xf32>
    tpu.vector_store %arg5[%c0_11, %c0_12], %10 {strides = array<i32>} : memref<8x128xf32, #tpu.memory_space<vmem>>, vector<8x128xf32>,
    return
  }
  func.func @transform_0(%arg0: i32) -> (i32, i32) {
    %c0_i32 = arith.constant 0 : i32
    %c0_i32_0 = arith.constant 0 : i32
    return %c0_i32, %arg0 : i32, i32
  }
  func.func @transform_1(%arg0: i32) -> (i32, i32) {
    %c0_i32 = arith.constant 0 : i32
    %c0_i32_0 = arith.constant 0 : i32
    %c0_i32_1 = arith.constant 0 : i32
    return %c0_i32, %c0_i32_0 : i32, i32
  }
  func.func @transform_2(%arg0: i32) -> (i32, i32) {
    %c0_i32 = arith.constant 0 : i32
    %c0_i32_0 = arith.constant 0 : i32
    %c0_i32_1 = arith.constant 0 : i32
    return %c0_i32, %c0_i32_0 : i32, i32
  }
  func.func @transform_3(%arg0: i32) -> (i32, i32) {
    %c0_i32 = arith.constant 0 : i32
    %c0_i32_0 = arith.constant 0 : i32
    %c0_i32_1 = arith.constant 0 : i32
    return %c0_i32, %c0_i32_0 : i32, i32
  }
  func.func @transform_4(%arg0: i32) -> (i32, i32) {
    %c0_i32 = arith.constant 0 : i32
    %c0_i32_0 = arith.constant 0 : i32
    return %c0_i32, %arg0 : i32, i32
  }
}

</mosaic_0001>

<bundles_post_ra>
// kernel: mlp_forward.1
= control target key start
LH: loop header
LB: loop body
LE: loop exit
PB: predicated region body
PF: predicated region fallthrough
CT: control target
= control target key end

     0   :  { %vm21_vm0 = vcmask 64512   ;;  %v327_v0 = vmov 0.0   ;;  %vm328_vm1 = vmmov 0   ;;  %vm116_vm2 = vcmask 195584   ;;  %s384_s0 = inlined_call_operand.vmem [shape: f32[8,128], index: 0, kind: input, shape index: {}]   ;;  %s385_s1 = inlined_call_operand.vmem [shape: f32[24,8], index: 1, kind: input, shape index: {}]   ;;  %s386_s2 = inlined_call_operand.vmem [shape: f32[16,24], index: 2, kind: input, shape index: {}]   ;;  %s387_s3 = inlined_call_operand.vmem [shape: f32[8,16], index: 3, kind: input, shape index: {}]   ;;  %s388_s4 = inlined_call_operand.vmem [shape: f32[8,128], index: 4, kind: output, shape index: {}]  }
   0x1   :  { %298 = vmatprep.subr.mxu0 %v327_v0  ;;  %v17_v1 = vld [vmem:[%s384_s0] sm:$0xff]  ;;  %300 = vmatprep.mubr.msk.f32.mxu0 %vm328_vm1, %v327_v0  ;;  %v19_v3 = vld [vmem:[%s385_s1 + $0x8] sm:$0xff]  ;;  %v20_v4 = vld [vmem:[%s385_s1 + $0x10] sm:$0xff]  ;;  %vm201_vm3 = vcmask 130048  }
   0x2   :  { %v18_v2 = vld [vmem:[%s385_s1] sm:$0xff]  ;;  %299 = vmatpush3.msra.mxu0 %v17_v1  ;;  %v115_v15 = vld [vmem:[%s386_s2 + $0x8] sm:$0xff] }
   0x3   :  { %301 = vmatmul.mubr.msk.f32.vlgmr.msra.gmra.mxu0 %vm21_vm0, %v18_v2  ;;  %v114_v5 = vld [vmem:[%s386_s2] sm:$0xff] }
   0x4   :  { %303 = vmatprep.mubr.msk.f32.mxu0 %vm328_vm1, %v327_v0  ;;  %315 = vmatprep.mubr.msk.f32.mxu1 %vm116_vm2, %v114_v5  ;;  %v200_v20 = vld [vmem:[%s387_s3] sm:$0xff] }
   0x7   :  { %304 = vmatmul.mubr.msk.f32.gmra.mxu0 %vm21_vm0, %v19_v3 }
   0x8   :  { %306 = vmatprep.mubr.msk.f32.mxu0 %vm328_vm1, %v327_v0 }
   0xb   :  { %307 = vmatmul.mubr.msk.f32.gmra.mxu0 %vm21_vm0, %v20_v4 }
  0xc3   :  { %v97_v6 = vpop.f32.mrf.mxu0 }
  0xc4   :  { %v111_v14 = vmax.f32 %v97_v6, 0.0 }
  0xc5   :  { %v302_v7 = vpop.f32.mrf.mxu0 }
  0xc7   :  { %v102_v8 = vpop.f32.mrf.mxu0 }
  0xc8   :  { %v112_v13 = vmax.f32 %v102_v8, 0.0 }
  0xc9   :  { %v305_v9 = vpop.f32.mrf.mxu0 }
  0xcb   :  { %v107_v10 = vpop.f32.mrf.mxu0 }
  0xcc   :  { %v113_v11 = vmax.f32 %v107_v10, 0.0 }
  0xcd   :  { %v308_v12 = vpop.f32.mrf.mxu0 }
  0xce   :  { %309 = vmatprep.subr.mxu1 %v113_v11 }
  0xcf   :  { %310 = vmatpush3.msra.mxu1 %v113_v11 }
  0xd0   :  { %311 = vmatprep.subr.mxu1 %v112_v13 }
  0xd1   :  { %312 = vmatpush3.msra.mxu1 %v112_v13 }
  0xd2   :  { %313 = vmatprep.subr.mxu1 %v111_v14 }
  0xd3   :  { %314 = vmatpush3.msra.mxu1 %v111_v14 }
  0xd4   :  { %316 = vmatmul.mubr.msk.f32.vlgmr.msra.gmra.mxu1 %vm116_vm2, %v115_v15  ;;  %318 = vmatprep.subr.mxu1 %v327_v0 }
  0xd5   :  { %322 = vmatprep.mubr.msk.f32.mxu1 %vm328_vm1, %v327_v0 }
 0x194   :  { %v317_v16 = vpop.f32.mrf.mxu1 }
 0x195   :  { %v199_v17 = vmax.f32 %v317_v16, 0.0 }
 0x196   :  { %v189_v18 = vpop.f32.mrf.mxu1 }
 0x197   :  { %v198_v19 = vmax.f32 %v189_v18, 0.0  ;;  %319 = vmatpush3.msra.mxu1 %v199_v17 }
 0x198   :  { %320 = vmatprep.subr.mxu1 %v327_v0 }
 0x199   :  { %321 = vmatpush3.msra.mxu1 %v198_v19 }
 0x19a   :  { %323 = vmatmul.mubr.msk.f32.vlgmr.msra.gmra.mxu1 %vm201_vm3, %v200_v20 }
 0x25a   :  { %v271_v21 = vpop.f32.mrf.mxu1 }
 0x25b   :  { %275 = vst [vmem:[%s388_s4] sm:$0xff] %v271_v21 }
 0x25c   :  { %v324_v22 = vpop.f32.mrf.mxu1 }

</bundles_post_ra>
